<compile_context>
chip_gen: v6e
topology: v6e:2x2x1
jax: 0.10.0
libtpu: 0.0.40
codegen_flags: <defaults>
</compile_context>

<pallas_src>
import functools
import math

import jax
import jax.numpy as jnp
from jax import lax
from jax.experimental import pallas as pl
from jax.experimental.pallas import tpu as pltpu


def _round_up(x, m):
    return ((x + m - 1) // m) * m


def pack_policy_params(w_mu, b_mu, w_ls=None, b_ls=None):
    """Pack head weights into a single lane-dense [F, N] weight + [1, N] bias.

    Call ONCE at init (not per forward). If w_ls/b_ls are omitted, only the mu
    head is packed (the default hot path used by Categorical). If provided and
    2*A <= 128, both heads share one 128-lane block (mu in [0,A), log_std in
    [A,2A)); otherwise the log_std head starts at the next 128-lane boundary.
    Returns (packed_w, packed_b, layout_dict).
    """
    F_, A = w_mu.shape
    if w_ls is None:
        N = _round_up(A, 128)
        w = jnp.zeros((F_, N), jnp.float32).at[:, :A].set(w_mu)
        b = jnp.zeros((1, N), jnp.float32).at[0, :A].set(b_mu)
        return w, b, {"n_actions": A, "ls_off": None, "n_lanes": N}

    if 2 * A <= 128:
        N, ls_off = 128, A
    else:
        apad = _round_up(A, 128)
        N, ls_off = 2 * apad, apad
    w = jnp.zeros((F_, N), jnp.float32)
    w = w.at[:, :A].set(w_mu).at[:, ls_off:ls_off + A].set(w_ls)
    b = jnp.zeros((1, N), jnp.float32)
    b = b.at[0, :A].set(b_mu).at[0, ls_off:ls_off + A].set(b_ls)
    return w, b, {"n_actions": A, "ls_off": ls_off, "n_lanes": N}


def _policy_kernel(x_ref, w_ref, b_ref, probs_ref, *maybe_std_ref, n_actions):
    std_ref = maybe_std_ref[0] if maybe_std_ref else None

    x = x_ref[...]                                             # [TB, F]
    # Single fused matmul for the packed head(s): [TB, N]
    y = jnp.dot(x, w_ref[...],
                preferred_element_type=jnp.float32) + b_ref[...]

    # probs = softmax(mu) over the real action lanes only; lanes >= n_actions
    # (zero pad or co-packed log_std) are masked to -inf -> exp() == 0.
    lane = lax.broadcasted_iota(jnp.int32, y.shape, dimension=1)
    valid = lane < n_actions
    mu_m = jnp.where(valid, y, -jnp.inf)
    m = jnp.max(mu_m, axis=-1, keepdims=True)
    e = jnp.exp(mu_m - m)
    denom = jnp.sum(e, axis=-1, keepdims=True)
    probs = e / denom                                          # exact divide
    probs_ref[...] = probs.astype(probs_ref.dtype)

    # Optional std = exp(clamp(log_std, -20, 2)), computed over the whole
    # lane block; the wrapper slices out the log_std lanes.
    if std_ref is not None:
        std = jnp.exp(jnp.clip(y, -20.0, 2.0))
        std_ref[...] = std.astype(std_ref.dtype)


def policy_network_forward(features, packed_w, packed_b, layout, *,
                           compute_std=False):
    """features: [B, F] f32; packed_w/b/layout from pack_policy_params.

    Returns probs [B, A] (and std [B, A] if compute_std=True, which requires
    params packed with the log_std head).
    """
    B, F_ = features.shape
    A = layout["n_actions"]
    N = layout["n_lanes"]
    ls_off = layout["ls_off"]
    if compute_std and ls_off is None:
        raise ValueError("compute_std=True requires params packed with log_std head")

    TB = min(512, _round_up(B, 8))        # sublane-aligned batch tile
    BP = _round_up(B, TB)                 # padded batch
    x = features if BP == B else jnp.pad(features, ((0, BP - B), (0, 0)))

    grid = (BP // TB,)
    in_specs = [
        pl.BlockSpec((TB, F_), lambda i: (i, 0)),
        pl.BlockSpec((F_, N), lambda i: (0, 0)),
        pl.BlockSpec((1, N), lambda i: (0, 0)),
    ]
    out_block = pl.BlockSpec((TB, N), lambda i: (i, 0))

    if compute_std:
        out_shape = (jax.ShapeDtypeStruct((BP, N), jnp.float32),
                     jax.ShapeDtypeStruct((BP, N), jnp.float32))
        out_specs = (out_block, out_block)
    else:
        out_shape = jax.ShapeDtypeStruct((BP, N), jnp.float32)
        out_specs = out_block

    kernel = functools.partial(_policy_kernel, n_actions=A)

    result = pl.pallas_call(
        kernel,
        out_shape=out_shape,
        grid=grid,
        in_specs=in_specs,
        out_specs=out_specs,
        compiler_params=pltpu.CompilerParams(
            dimension_semantics=("parallel",)),
    )(x, packed_w, packed_b)

    if compute_std:
        probs_p, std_p = result
        return probs_p[:B, :A], std_p[:B, ls_off:ls_off + A]
    return result[:B, :A]


def _xavier_uniform(key, fan_out, fan_in):
    # matches nn.init.xavier_uniform_ for a Linear weight of shape [out, in]
    bound = math.sqrt(6.0 / (fan_in + fan_out))
    return jax.random.uniform(key, (fan_out, fan_in), jnp.float32,
                              minval=-bound, maxval=bound)


if __name__ == "__main__":
    n_features = 32
    n_actions = 8
    batch = 4

    key = jax.random.PRNGKey(0)
    k_x, k_mu, k_ls = jax.random.split(key, 3)

    features = jax.random.normal(k_x, (batch, n_features), jnp.float32)

    # Deterministic parameter init mirroring the module's __init__:
    # xavier-uniform weights, zero biases.
    w_mu_t = _xavier_uniform(k_mu, n_actions, n_features)   # [A, F] torch layout
    w_ls_t = _xavier_uniform(k_ls, n_actions, n_features)
    b_mu = jnp.zeros((n_actions,), jnp.float32)
    b_ls = jnp.zeros((n_actions,), jnp.float32)

    w_mu = w_mu_t.T                                          # [F, A]
    w_ls = w_ls_t.T

    # Pack params ONCE (init-time), outside the per-call hot path.
    w_hot, b_hot, layout_hot = pack_policy_params(w_mu, b_mu)               # mu only
    w_full, b_full, layout_full = pack_policy_params(w_mu, b_mu, w_ls, b_ls)  # both heads

    # Hot path: probs only (what Categorical consumes).
    probs = policy_network_forward(features, w_hot, b_hot, layout_hot)
    # Full-parity path: also compute std = exp(clamp(log_std, -20, 2)).
    probs2, std = policy_network_forward(features, w_full, b_full, layout_full,
                                         compute_std=True)
    jax.block_until_ready((probs, probs2, std))

    # Reference in plain JAX
    mu_ref = features @ w_mu + b_mu
    ls_ref = features @ w_ls + b_ls
    probs_ref = jax.nn.softmax(mu_ref, axis=-1)
    std_ref = jnp.exp(jnp.clip(ls_ref, -20.0, 2.0))

    assert probs.shape == (batch, n_actions)
    assert std.shape == (batch, n_actions)
    assert jnp.allclose(probs, probs_ref, atol=1e-5, rtol=1e-5)
    assert jnp.allclose(probs2, probs_ref, atol=1e-5, rtol=1e-5)
    assert jnp.allclose(std, std_ref, atol=1e-5, rtol=1e-5)
    assert jnp.allclose(jnp.sum(probs, axis=-1), 1.0, atol=1e-5)
    assert jnp.allclose(jnp.sum(probs2, axis=-1), 1.0, atol=1e-5)

    # TODO(synk): Categorical sampling / log_prob (sample_or_likelihood) is
    # host-side RNG glue, not implemented in-kernel; the returned probs feed it.
    print("KERNEL_OK")
</pallas_src>

<mosaic_0001>
module attributes {stable_mosaic.version = 11 : i64} {
  func.func @_policy_kernel(%arg0: i32, %arg1: memref<8x32xf32, #tpu.memory_space<vmem>>, %arg2: memref<32x128xf32, #tpu.memory_space<vmem>>, %arg3: memref<1x128xf32, #tpu.memory_space<vmem>>, %arg4: memref<8x128xf32, #tpu.memory_space<vmem>>) attributes {dimension_semantics = [#tpu.dimension_semantics<parallel>], iteration_bounds = array<i64: 1>, scalar_prefetch = 0 : i64, scratch_operands = 0 : i64, tpu.core_type = #tpu.core_type<tc>, window_params = [{transform_indices = @transform_0, window_bounds = array<i64: 8, 32>}, {pipeline_mode = #tpu.pipeline_mode<synchronous>, transform_indices = @transform_1, window_bounds = array<i64: 32, 128>}, {pipeline_mode = #tpu.pipeline_mode<synchronous>, transform_indices = @transform_2, window_bounds = array<i64: 1, 128>}, {transform_indices = @transform_3, window_bounds = array<i64: 8, 128>}]} {
    %c0 = arith.constant 0 : index
    %c0_0 = arith.constant 0 : index
    %0 = vector.load %arg1[%c0, %c0_0] : memref<8x32xf32, #tpu.memory_space<vmem>>, vector<8x32xf32>
    %c0_1 = arith.constant 0 : index
    %c0_2 = arith.constant 0 : index
    %1 = vector.load %arg2[%c0_1, %c0_2] : memref<32x128xf32, #tpu.memory_space<vmem>>, vector<32x128xf32>
    %cst = arith.constant dense<0.000000e+00> : vector<8x128xf32>
    %2 = tpu.matmul %0, %1, %cst {dimension_numbers = #tpu.dot_dimension_numbers<[1], [0], [0], [1], [0, 0, 1, 1], [], []>} : vector<8x32xf32>, vector<32x128xf32>, vector<8x128xf32> -> vector<8x128xf32>
    %c0_3 = arith.constant 0 : index
    %c0_4 = arith.constant 0 : index
    %3 = vector.load %arg3[%c0_3, %c0_4] : memref<1x128xf32, #tpu.memory_space<vmem>>, vector<1x128xf32>
    %4 = vector.broadcast %3 : vector<1x128xf32> to vector<8x128xf32>
    %5 = arith.addf %2, %4 : vector<8x128xf32>
    %6 = tpu.iota {dimensions = array<i32: 1>} : vector<8x128xi32>
    %c8_i32 = arith.constant 8 : i32
    %7 = vector.broadcast %c8_i32 : i32 to vector<8x128xi32>
    %8 = arith.cmpi slt, %6, %7 : vector<8x128xi32>
    %cst_5 = arith.constant 0xFF800000 : f32
    %9 = vector.broadcast %cst_5 : f32 to vector<8x128xf32>
    %10 = arith.select %8, %5, %9 : vector<8x128xi1>, vector<8x128xf32>
    %cst_6 = arith.constant dense<0xFF800000> : vector<8xf32>
    %11 = vector.multi_reduction <maximumf>, %10, %cst_6 [1] : vector<8x128xf32> to vector<8xf32>
    %12 = vector.shape_cast %11 : vector<8xf32> to vector<8x1xf32>
    %13 = vector.broadcast %12 : vector<8x1xf32> to vector<8x128xf32>
    %14 = arith.subf %10, %13 : vector<8x128xf32>
    %15 = math.exp %14 : vector<8x128xf32>
    %cst_7 = arith.constant dense<0.000000e+00> : vector<8xf32>
    %16 = vector.multi_reduction <add>, %15, %cst_7 [1] : vector<8x128xf32> to vector<8xf32>
    %17 = vector.shape_cast %16 : vector<8xf32> to vector<8x1xf32>
    %18 = vector.broadcast %17 : vector<8x1xf32> to vector<8x128xf32>
    %19 = arith.divf %15, %18 : vector<8x128xf32>
    %c0_8 = arith.constant 0 : index
    %c0_9 = arith.constant 0 : index
    %20 = vector.load %arg4[%c0_8, %c0_9] : memref<8x128xf32, #tpu.memory_space<vmem>>, vector<8x128xf32>
    tpu.vector_store %arg4[%c0_8, %c0_9], %19 {strides = array<i32>} : memref<8x128xf32, #tpu.memory_space<vmem>>, vector<8x128xf32>,
    return
  }
  func.func @transform_0(%arg0: i32) -> (i32, i32) {
    %c0_i32 = arith.constant 0 : i32
    %c0_i32_0 = arith.constant 0 : i32
    return %arg0, %c0_i32 : i32, i32
  }
  func.func @transform_1(%arg0: i32) -> (i32, i32) {
    %c0_i32 = arith.constant 0 : i32
    %c0_i32_0 = arith.constant 0 : i32
    %c0_i32_1 = arith.constant 0 : i32
    return %c0_i32, %c0_i32_0 : i32, i32
  }
  func.func @transform_2(%arg0: i32) -> (i32, i32) {
    %c0_i32 = arith.constant 0 : i32
    %c0_i32_0 = arith.constant 0 : i32
    %c0_i32_1 = arith.constant 0 : i32
    return %c0_i32, %c0_i32_0 : i32, i32
  }
  func.func @transform_3(%arg0: i32) -> (i32, i32) {
    %c0_i32 = arith.constant 0 : i32
    %c0_i32_0 = arith.constant 0 : i32
    return %arg0, %c0_i32 : i32, i32
  }
}

</mosaic_0001>

<bundles_post_ra>
// kernel: tpu_custom_call.1
= control target key start
LH: loop header
LB: loop body
LE: loop exit
PB: predicated region body
PF: predicated region fallthrough
CT: control target
= control target key end

     0   :  { %8 = vsyncpa [#allocation3], 0  ;;  %s291_s0 = inlined_call_operand.hbm [shape: f32[8,32], index: 0, kind: input, shape index: {}]   ;;  %s292_s1 = inlined_call_operand.hbm [shape: f32[32,128], index: 1, kind: input, shape index: {}]   ;;  %s293_s2 = inlined_call_operand.vmem [shape: f32[1,128], index: 2, kind: input, shape index: {}]   ;;  %s294_s3 = inlined_call_operand.hbm [shape: f32[8,128], index: 3, kind: output, shape index: {}]  }
   0x1   :  { %9 = vsyncpa [#allocation6], 0 }
   0x2   :  { %10 = vsyncpa [#allocation4], 0  ;;  %s252_s12 = smov [#allocation2]   ;;  %s253_s14 = smov [#allocation5]  }
   0x3   :  { %s17_s13 = sshll.u32 %s252_s12, 4  ;;  %s26_s15 = sshll.u32 %s253_s14, 4  ;;  %s18_s13 = int_to_ptr.vmem [resolvable:$true] %s17_s13  ;;  %s27_s15 = int_to_ptr.vmem [resolvable:$true] %s26_s15 }
   0x4   :  { %s194_s16 = scalar_lea.vmem %s18_s13, 128  ;;  %p199_p1 = scmp.lt.s32.totalorder %s18_s13, %s18_s13 }
   0x5   :  { %p195_p0 = scmp.ne.s32.totalorder %s18_s13, %s194_s16  ;;  %p200_p2 = scmp.lt.s32.totalorder %s194_s16, %s194_s16 }
   0x7   :  { %p201_p3 = por %p200_p2, %p199_p1 }
   0x9   :  { %p202_p4 = pnand %p201_p3, %p195_p0 }
   0xb   :  { %205 = shalt.err (!%p202_p4)
}
   0xc   :  { %20 = dma.hbm_to_vmem [thread:$0]  %s291_s0, 128, %s18_s13, [#allocation3]  }
   0xd   :  { %s214_s19 = scalar_lea.vmem %s27_s15, 512  ;;  %p219_p6 = scmp.lt.s32.totalorder %s27_s15, %s27_s15 }
   0xe   :  { %p215_p5 = scmp.ne.s32.totalorder %s27_s15, %s214_s19  ;;  %p220_p7 = scmp.lt.s32.totalorder %s214_s19, %s214_s19 }
  0x10   :  { %p221_p8 = por %p220_p7, %p219_p6 }
  0x12   :  { %p222_p9 = pnand %p221_p8, %p215_p5 }
  0x14   :  { %225 = shalt.err (!%p222_p9)
}
  0x15   :  { %s254_s20 = smov 128   ;;  %s255_s21 = smov 8  }
  0x16   :  { %32 = dma.hbm_to_vmem [thread:$0]  %s292_s1, 512, %s27_s15, [#allocation6], %s254_s20, %s254_s20, %s255_s21  }
  0x17   :  { %246 = dma.done.wait [#allocation3], 128  }
  0x18   :  { %247 = vsyncadd [#allocation3], 4294967168 }
  0x19   :  { %248 = dma.done.wait [#allocation6], 512  }
  0x1a   :  { %249 = vsyncadd [#allocation6], 4294966784  ;;  %v256_v0 = vmov 0.0   ;;  %vm257_vm0 = vmmov 0   ;;  %v45_v1 = vld [vmem:[#allocation5 + $0x18] sm:$0xff]  ;;  %v44_v2 = vld [vmem:[#allocation5 + $0x10] sm:$0xff]  ;;  %v127_v6 = vlaneseq }
  0x1b   :  { %164 = vmatprep.subr.mxu0 %v256_v0  ;;  %172 = vmatprep.mubr.msk.f32.mxu0 %vm257_vm0, %v256_v0  ;;  %v43_v3 = vld [vmem:[#allocation5 + $0x8] sm:$0xff]  ;;  %v42_v4 = vld [vmem:[#allocation5] sm:$0xff]  ;;  %v41_v5 = vld [vmem:[#allocation2] sm:$0xff]  ;;  %vm53_vm1 = vcmask 261120   ;;  %s258_s24 = smov [#allocation7]  }
  0x1c   :  { %165 = vmatpush3.msra.mxu0 %v45_v1  ;;  %v128_v7 = vand.u32 127, %v127_v6  ;;  %v157_v8 = vld [vmem:[%s293_s2] ss:$0 sm:$0xff]  ;;  %s147_s25 = sshll.u32 %s258_s24, 4  ;;  %s148_s25 = int_to_ptr.vmem [resolvable:$true] %s147_s25 }
  0x1d   :  { %166 = vmatprep.subr.mxu0 %v256_v0  ;;  %s226_s2 = scalar_lea.vmem %s148_s25, 128  ;;  %p231_p11 = scmp.lt.s32.totalorder %s148_s25, %s148_s25 }
  0x1e   :  { %167 = vmatpush3.msra.mxu0 %v44_v2  ;;  %vm129_vm2 = vcmp.lt.s32.totalorder %v128_v7, 8  ;;  %p227_p10 = scmp.ne.s32.totalorder %s148_s25, %s226_s2  ;;  %p232_p12 = scmp.lt.s32.totalorder %s226_s2, %s226_s2 }
  0x1f   :  { %168 = vmatprep.subr.mxu0 %v256_v0 }
  0x20   :  { %169 = vmatpush3.msra.mxu0 %v43_v3  ;;  %p233_p13 = por %p232_p12, %p231_p11 }
  0x21   :  { %170 = vmatprep.subr.mxu0 %v256_v0 }
  0x22   :  { %171 = vmatpush3.msra.mxu0 %v42_v4  ;;  %p234_p0 = pnand %p233_p13, %p227_p10 }
  0x23   :  { %173 = vmatmul.mubr.msk.f32.vlgmr.msra.gmra.mxu0 %vm53_vm1, %v41_v5 }
  0xe3   :  { %v123_v9 = vpop.f32.mrf.mxu0 }
  0xe4   :  { %v124_v10 = vadd.f32 %v157_v8, %v123_v9 }
  0xe5   :  { %v174_v11 = vpop.f32.mrf.mxu0 }
  0xe6   :  { %v130_v12 = vsel %vm129_vm2, %v124_v10, -inf }
  0xe7   :  { %131 = vmax.xlane.f32.xlu0 %v130_v12 }
 0x170   :  { %v132_v13 = vpop.xlane.xlu0 %131 }
 0x171   :  { %v133_v14 = vsub.f32 %v130_v12, %v132_v13 }
 0x173   :  { %v134_v15 = vmul.f32 1.442695, %v133_v14 }
 0x175   :  { %182 = vpow2.f32 %v134_v15 }
 0x182   :  { %v183_v16 = vpop.eup %182 }
 0x183   :  { %136 = vadd.xlane.f32.xlu0 %v183_v16 }
 0x20c   :  { %v137_v17 = vpop.xlane.xlu0 %136 }
 0x20d   :  { %184 = vrcp.f32 %v137_v17 }
 0x21a   :  { %v185_v18 = vpop.eup %184 }
 0x21b   :  { %v139_v19 = vmul.f32 %v185_v18, %v183_v16 }
 0x21d   :  { %140 = vst [vmem:[#allocation7] sm:$0xff] %v139_v19 }
 0x21e   :  { %237 = shalt.err (!%p234_p0)
}
 0x21f   :  { %150 = dma.vmem_to_hbm [thread:$0]  %s148_s25, 128, %s294_s3, [#allocation4]  }
 0x220   :  { %250 = dma.done.wait [#allocation4], 128  }
 0x221   :  { %251 = vsyncadd [#allocation4], 4294967168 }
 0x222   :  { %154 = vsyncpa [#allocation3], 1 }
 0x223   :  { %155 = vsyncpa [#allocation6], 1 }
 0x224   :  { %156 = vsyncpa [#allocation4], 1 }

</bundles_post_ra>
